<compile_context>
chip_gen: v6e
topology: v6e:2x2x1
jax: 0.10.0
libtpu: 0.0.40
codegen_flags: <defaults>
</compile_context>

<pallas_src>
import functools
import math

import jax
import jax.numpy as jnp
from jax.experimental import pallas as pl
from jax.experimental.pallas import tpu as pltpu

# Scoped-VMEM headroom; safe on v5e (128 MiB phys), v6e (128), v7x (64).
_VMEM_LIMIT = 48 * 1024 * 1024


# ------------------------------ tiling helper -------------------------------

def _pick_tile(dim, target, align):
    """Largest tile <= target that divides dim and is a multiple of `align`,
    else the full dimension (full-dim blocks are always legal)."""
    if dim <= target:
        return dim
    t = (target // align) * align
    while t >= align:
        if dim % t == 0:
            return t
        t -= align
    return dim


# ----------------------------- linear kernels --------------------------------

def _linear_kernel(x_ref, w_ref, b_ref, o_ref, acc_ref, *, activation):
    k = pl.program_id(2)

    @pl.when(k == 0)
    def _():
        acc_ref[...] = jnp.zeros_like(acc_ref)

    # bf16 x bf16 -> f32 accumulation on the MXU
    acc_ref[...] += jnp.dot(x_ref[...], w_ref[...],
                            preferred_element_type=jnp.float32)

    @pl.when(k == pl.num_programs(2) - 1)
    def _():
        y = acc_ref[...] + b_ref[...].astype(jnp.float32)
        if activation == "gelu":
            # exact (erf) GELU, matching torch.nn.GELU default
            y = 0.5 * y * (1.0 + jax.lax.erf(y * (1.0 / math.sqrt(2.0))))
        o_ref[...] = y.astype(o_ref.dtype)


def pallas_linear(x, w, b, activation=None, *, tm=512, tn=512, tk=512):
    """y = act(x @ w + b); bf16 operands, f32 accumulator, bf16 output."""
    T, Din = x.shape
    Dout = w.shape[1]
    x = x.astype(jnp.bfloat16)
    w = w.astype(jnp.bfloat16)
    tm = _pick_tile(T, tm, 8)
    tn = _pick_tile(Dout, tn, 128)
    tk = _pick_tile(Din, tk, 128)
    kern = functools.partial(_linear_kernel, activation=activation)
    return pl.pallas_call(
        kern,
        out_shape=jax.ShapeDtypeStruct((T, Dout), jnp.bfloat16),
        grid=(T // tm, Dout // tn, Din // tk),
        in_specs=[
            pl.BlockSpec((tm, tk), lambda i, j, k: (i, k)),
            pl.BlockSpec((tk, tn), lambda i, j, k: (k, j)),
            pl.BlockSpec((1, tn), lambda i, j, k: (0, j)),
        ],
        out_specs=pl.BlockSpec((tm, tn), lambda i, j, k: (i, j)),
        scratch_shapes=[pltpu.VMEM((tm, tn), jnp.float32)],
        compiler_params=pltpu.CompilerParams(
            dimension_semantics=("parallel", "parallel", "arbitrary"),
            vmem_limit_bytes=_VMEM_LIMIT),
    )(x, w, b.astype(jnp.float32).reshape(1, Dout))


def _linear_res_ln_kernel(x_ref, w_ref, b_ref, res_ref, g_ref, beta_ref,
                          o_ref, *, eps):
    # Single matmul per token tile (no K axis): the full weight block stays
    # resident in VMEM across token tiles.
    h = jnp.dot(x_ref[...], w_ref[...], preferred_element_type=jnp.float32)
    h = h + b_ref[...].astype(jnp.float32) + res_ref[...].astype(jnp.float32)
    mean = jnp.mean(h, axis=-1, keepdims=True)
    hc = h - mean
    var = jnp.mean(hc * hc, axis=-1, keepdims=True)
    y = hc * jax.lax.rsqrt(var + eps)
    o_ref[...] = (y * g_ref[...].astype(jnp.float32)
                  + beta_ref[...].astype(jnp.float32)).astype(o_ref.dtype)


def pallas_linear_residual_ln(x, w, b, residual, gamma, beta,
                              *, tm=256, eps=1e-5):
    """LayerNorm(residual + x @ w + b); grid over token tiles only.

    tm=256 keeps the fc2 (F x D) case comfortably inside v7x's smaller VMEM;
    on v6e (128 MiB) tm=512 is also fine with the raised vmem limit."""
    T, Din = x.shape
    Dout = w.shape[1]
    x = x.astype(jnp.bfloat16)
    w = w.astype(jnp.bfloat16)
    residual = residual.astype(jnp.bfloat16)
    tm = _pick_tile(T, tm, 8)
    kern = functools.partial(_linear_res_ln_kernel, eps=eps)
    return pl.pallas_call(
        kern,
        out_shape=jax.ShapeDtypeStruct((T, Dout), jnp.bfloat16),
        grid=(T // tm,),
        in_specs=[
            pl.BlockSpec((tm, Din), lambda i: (i, 0)),
            pl.BlockSpec((Din, Dout), lambda i: (0, 0)),   # weight resident
            pl.BlockSpec((1, Dout), lambda i: (0, 0)),
            pl.BlockSpec((tm, Dout), lambda i: (i, 0)),
            pl.BlockSpec((1, Dout), lambda i: (0, 0)),
            pl.BlockSpec((1, Dout), lambda i: (0, 0)),
        ],
        out_specs=pl.BlockSpec((tm, Dout), lambda i: (i, 0)),
        compiler_params=pltpu.CompilerParams(
            dimension_semantics=("parallel",),
            vmem_limit_bytes=_VMEM_LIMIT),
    )(x, w, b.astype(jnp.float32).reshape(1, Dout), residual,
      gamma.astype(jnp.float32).reshape(1, Dout),
      beta.astype(jnp.float32).reshape(1, Dout))


# ---------------------------- attention kernel -------------------------------

def _attention_kernel(q_ref, kv_ref, o_ref, *, num_heads, scale, causal):
    _, tq, D = q_ref.shape
    Sk = kv_ref.shape[1]
    H = num_heads
    Dh = D // H

    # Fold the softmax scale into q: O(S*D) multiply instead of O(S^2).
    q = (q_ref[0].astype(jnp.float32) * scale).astype(jnp.bfloat16)   # [tq, D]
    kv = kv_ref[0]                                                    # [Sk, 2D]
    k = kv[:, :D]
    v = kv[:, D:]

    # Head-major layout -> one batched MXU matmul per phase
    # (no per-head 64-lane slices, no concatenate).
    qh = jnp.swapaxes(q.reshape(tq, H, Dh), 0, 1)    # [H, tq, Dh]
    kh = jnp.swapaxes(k.reshape(Sk, H, Dh), 0, 1)    # [H, Sk, Dh]
    vh = jnp.swapaxes(v.reshape(Sk, H, Dh), 0, 1)    # [H, Sk, Dh]

    s = jnp.einsum('hqd,hkd->hqk', qh, kh,
                   preferred_element_type=jnp.float32)   # [H, tq, Sk] f32

    if causal:
        q0 = pl.program_id(1) * tq
        row = jax.lax.broadcasted_iota(jnp.int32, (tq, Sk), 0) + q0
        col = jax.lax.broadcasted_iota(jnp.int32, (tq, Sk), 1)
        s = jnp.where((col <= row)[None, :, :], s, -1e30)

    m = jnp.max(s, axis=-1, keepdims=True)
    p = jnp.exp(s - m)
    l = jnp.sum(p, axis=-1, keepdims=True)
    # Normalize AFTER the PV matmul: [H,tq,Dh]-sized multiply, not [H,tq,Sk].
    o = jnp.einsum('hqk,hkd->hqd', p.astype(jnp.bfloat16), vh,
                   preferred_element_type=jnp.float32)
    o = o * pl.reciprocal(l, approx=True)
    # single lane-dense [tq, D] store
    o_ref[0] = jnp.swapaxes(o, 0, 1).reshape(tq, D).astype(o_ref.dtype)


def pallas_attention(q, kv, num_heads, scale, causal, *, tq=128):
    """q: [B, Sq, D]; kv: [B, Sk, 2D] -> [B, Sq, D].

    Grid (B, Sq//tq): q is row-tiled, K/V slab is resident across q tiles
    (constant block index -> no re-DMA); both grid axes are 'parallel'."""
    B, Sq, D = q.shape
    Sk = kv.shape[1]
    q = q.astype(jnp.bfloat16)
    kv = kv.astype(jnp.bfloat16)
    tq = _pick_tile(Sq, tq, 8)
    kern = functools.partial(_attention_kernel, num_heads=num_heads,
                             scale=scale, causal=causal)
    return pl.pallas_call(
        kern,
        out_shape=jax.ShapeDtypeStruct((B, Sq, D), jnp.bfloat16),
        grid=(B, Sq // tq),
        in_specs=[
            pl.BlockSpec((1, tq, D), lambda b, i: (b, i, 0)),
            pl.BlockSpec((1, Sk, 2 * D), lambda b, i: (b, 0, 0)),
        ],
        out_specs=pl.BlockSpec((1, tq, D), lambda b, i: (b, i, 0)),
        compiler_params=pltpu.CompilerParams(
            dimension_semantics=("parallel", "parallel"),
            vmem_limit_bytes=_VMEM_LIMIT),
    )(q, kv)


# --------------------------- decoder layer forward ---------------------------

def bart_decoder_layer_forward(dec_h, enc_h, p, num_heads):
    B, Sd, D = dec_h.shape
    Se = enc_h.shape[1]
    scale = (D // num_heads) ** -0.5
    bf16 = jnp.bfloat16

    # Weights cast to bf16 once (MXU-native); biases / LN params stay f32 and
    # are folded into the f32 epilogues inside the kernels.
    w = {k: (v.astype(bf16) if k.endswith("_w") else v) for k, v in p.items()}

    x = dec_h.astype(bf16).reshape(B * Sd, D)     # free reshape (contiguous)
    e = enc_h.astype(bf16).reshape(B * Se, D)

    # ---- decoder self-attention block ----
    q = pallas_linear(x, w["self_q_w"], p["self_q_b"])            # [Td, D]
    kv = pallas_linear(x, w["self_kv_w"], p["self_kv_b"])         # [Td, 2D]
    attn = pallas_attention(q.reshape(B, Sd, D), kv.reshape(B, Sd, 2 * D),
                            num_heads, scale, causal=True)
    # fused: out_proj + residual add + self_attn_layer_norm
    x = pallas_linear_residual_ln(attn.reshape(B * Sd, D),
                                  w["self_out_w"], p["self_out_b"],
                                  x, p["ln1_g"], p["ln1_b"])

    # ---- cross-attention block ----
    q = pallas_linear(x, w["cross_q_w"], p["cross_q_b"])          # [Td, D]
    kv = pallas_linear(e, w["cross_kv_w"], p["cross_kv_b"])       # [Te, 2D]
    attn = pallas_attention(q.reshape(B, Sd, D), kv.reshape(B, Se, 2 * D),
                            num_heads, scale, causal=False)
    # fused: out_proj + residual add + encoder_attn_layer_norm
    x = pallas_linear_residual_ln(attn.reshape(B * Sd, D),
                                  w["cross_out_w"], p["cross_out_b"],
                                  x, p["ln2_g"], p["ln2_b"])

    # ---- feed-forward block ----
    ff = pallas_linear(x, w["fc1_w"], p["fc1_b"], activation="gelu")
    # fused: fc2 + residual add + final_layer_norm
    x = pallas_linear_residual_ln(ff, w["fc2_w"], p["fc2_b"],
                                  x, p["ln3_g"], p["ln3_b"])
    return x.reshape(B, Sd, D).astype(jnp.float32)


# ------------------------------ reference (jnp) -------------------------------

def reference_forward(dec_h, enc_h, p, num_heads):
    B, Sd, D = dec_h.shape
    H = num_heads
    Dh = D // H
    scale = Dh ** -0.5

    def ln(x, g, b):
        m = jnp.mean(x, -1, keepdims=True)
        v = jnp.mean((x - m) ** 2, -1, keepdims=True)
        return (x - m) * jax.lax.rsqrt(v + 1e-5) * g + b

    def mha(q, k, v, causal):
        Sq, Sk = q.shape[1], k.shape[1]
        qh = q.reshape(B, Sq, H, Dh).transpose(0, 2, 1, 3)
        kh = k.reshape(B, Sk, H, Dh).transpose(0, 2, 1, 3)
        vh = v.reshape(B, Sk, H, Dh).transpose(0, 2, 1, 3)
        s = jnp.einsum("bhqd,bhkd->bhqk", qh, kh) * scale
        if causal:
            mask = jnp.tril(jnp.ones((Sq, Sk), bool))
            s = jnp.where(mask, s, -jnp.inf)
        pw = jax.nn.softmax(s, axis=-1)
        return jnp.einsum("bhqk,bhkd->bhqd", pw, vh).transpose(0, 2, 1, 3) \
                  .reshape(B, Sq, D)

    x = dec_h
    res = x
    q = x @ p["self_q_w"] + p["self_q_b"]
    kv = x @ p["self_kv_w"] + p["self_kv_b"]
    k, v = kv[..., :D], kv[..., D:]
    a = mha(q, k, v, causal=True) @ p["self_out_w"] + p["self_out_b"]
    x = ln(res + a, p["ln1_g"], p["ln1_b"])

    res = x
    q = x @ p["cross_q_w"] + p["cross_q_b"]
    kv = enc_h @ p["cross_kv_w"] + p["cross_kv_b"]
    k, v = kv[..., :D], kv[..., D:]
    a = mha(q, k, v, causal=False) @ p["cross_out_w"] + p["cross_out_b"]
    x = ln(res + a, p["ln2_g"], p["ln2_b"])

    res = x
    ff = jax.nn.gelu(x @ p["fc1_w"] + p["fc1_b"], approximate=False)
    ff = ff @ p["fc2_w"] + p["fc2_b"]
    x = ln(res + ff, p["ln3_g"], p["ln3_b"])
    return x


# -------------------------------- param init ----------------------------------

def init_params(key, cfg):
    D = cfg["d_model"]
    F = cfg["ffn_dim"]

    def normal(k, shape, std=0.02):
        return (std * jax.random.normal(k, shape)).astype(jnp.float32)

    ks = jax.random.split(key, 10)
    self_qkv_w = normal(ks[0], (D, 3 * D))
    self_qkv_b = normal(ks[1], (3 * D,))
    cross_qkv_w = normal(ks[2], (D, 3 * D))
    cross_qkv_b = normal(ks[3], (3 * D,))
    return {
        # fused qkv weights split once at init: q and kv projections are
        # separate matmuls (identical math; lets attention take row-tiled q)
        "self_q_w": self_qkv_w[:, :D],
        "self_q_b": self_qkv_b[:D],
        "self_kv_w": self_qkv_w[:, D:],
        "self_kv_b": self_qkv_b[D:],
        "self_out_w": normal(ks[4], (D, D)),
        "self_out_b": jnp.zeros((D,), jnp.float32),
        "ln1_g": jnp.ones((D,), jnp.float32),
        "ln1_b": jnp.zeros((D,), jnp.float32),
        "cross_q_w": cross_qkv_w[:, :D],
        "cross_q_b": cross_qkv_b[:D],
        "cross_kv_w": cross_qkv_w[:, D:],
        "cross_kv_b": cross_qkv_b[D:],
        "cross_out_w": normal(ks[5], (D, D)),
        "cross_out_b": jnp.zeros((D,), jnp.float32),
        "ln2_g": jnp.ones((D,), jnp.float32),
        "ln2_b": jnp.zeros((D,), jnp.float32),
        "fc1_w": normal(ks[6], (D, F)),
        "fc1_b": normal(ks[7], (F,)),
        "fc2_w": normal(ks[8], (F, D)),
        "fc2_b": normal(ks[9], (D,)),
        "ln3_g": jnp.ones((D,), jnp.float32),
        "ln3_b": jnp.zeros((D,), jnp.float32),
    }


# ----------------------------------- main --------------------------------------

if __name__ == "__main__":
    cfg = dict(d_model=32, num_heads=4, ffn_dim=64)
    B, Sd, Se = 2, 8, 16

    key = jax.random.PRNGKey(0)
    kp, kd, ke = jax.random.split(key, 3)
    params = init_params(kp, cfg)

    dec_h = jax.random.normal(kd, (B, Sd, cfg["d_model"]), jnp.float32)
    enc_h = jax.random.normal(ke, (B, Se, cfg["d_model"]), jnp.float32)

    out = bart_decoder_layer_forward(dec_h, enc_h, params, cfg["num_heads"])
    out = jax.block_until_ready(out)

    ref = reference_forward(dec_h, enc_h, params, cfg["num_heads"])
    assert out.shape == (B, Sd, cfg["d_model"])
    # bf16 matmul operands (f32 accumulation) -> slightly looser tolerance
    # than the previous all-f32 version.
    assert jnp.allclose(out, ref, atol=3e-2, rtol=3e-2), "mismatch vs reference"

    print("KERNEL_OK")
</pallas_src>

<mosaic_0001>
module attributes {stable_mosaic.version = 11 : i64} {
  func.func @_linear_kernel(%arg0: i32, %arg1: i32, %arg2: i32, %arg3: memref<16x32xbf16, #tpu.memory_space<vmem>>, %arg4: memref<32x32xbf16, #tpu.memory_space<vmem>>, %arg5: memref<1x32xf32, #tpu.memory_space<vmem>>, %arg6: memref<16x32xbf16, #tpu.memory_space<vmem>>, %arg7: memref<16x32xf32, #tpu.memory_space<vmem>>) attributes {dimension_semantics = [#tpu.dimension_semantics<parallel>, #tpu.dimension_semantics<parallel>, #tpu.dimension_semantics<arbitrary>], iteration_bounds = array<i64: 1, 1, 1>, scalar_prefetch = 0 : i64, scratch_operands = 1 : i64, tpu.core_type = #tpu.core_type<tc>, window_params = [{transform_indices = @transform_0, window_bounds = array<i64: 16, 32>}, {transform_indices = @transform_1, window_bounds = array<i64: 32, 32>}, {transform_indices = @transform_2, window_bounds = array<i64: 1, 32>}, {transform_indices = @transform_3, window_bounds = array<i64: 16, 32>}]} {
    %c0_i32 = arith.constant 0 : i32
    %0 = arith.cmpi eq, %arg2, %c0_i32 : i32
    %1 = arith.extui %0 : i1 to i32
    %c0_i32_0 = arith.constant 0 : i32
    %2 = arith.cmpi ne, %1, %c0_i32_0 : i32
    scf.if %2 {
      %cst_10 = arith.constant 0.000000e+00 : f32
      %12 = vector.broadcast %cst_10 : f32 to vector<16x32xf32>
      %c0_11 = arith.constant 0 : index
      %c0_12 = arith.constant 0 : index
      %13 = vector.load %arg7[%c0_11, %c0_12] : memref<16x32xf32, #tpu.memory_space<vmem>>, vector<16x32xf32>
      tpu.vector_store %arg7[%c0_11, %c0_12], %12 {strides = array<i32>} : memref<16x32xf32, #tpu.memory_space<vmem>>, vector<16x32xf32>,
    } else {
    }
    %c0 = arith.constant 0 : index
    %c0_1 = arith.constant 0 : index
    %3 = vector.load %arg7[%c0, %c0_1] : memref<16x32xf32, #tpu.memory_space<vmem>>, vector<16x32xf32>
    %c0_2 = arith.constant 0 : index
    %c0_3 = arith.constant 0 : index
    %4 = vector.load %arg3[%c0_2, %c0_3] : memref<16x32xbf16, #tpu.memory_space<vmem>>, vector<16x32xbf16>
    %c0_4 = arith.constant 0 : index
    %c0_5 = arith.constant 0 : index
    %5 = vector.load %arg4[%c0_4, %c0_5] : memref<32x32xbf16, #tpu.memory_space<vmem>>, vector<32x32xbf16>
    %cst = arith.constant dense<0.000000e+00> : vector<16x32xf32>
    %6 = tpu.matmul %4, %5, %cst {dimension_numbers = #tpu.dot_dimension_numbers<[1], [0], [0], [1], [0, 0, 1, 1], [], []>} : vector<16x32xbf16>, vector<32x32xbf16>, vector<16x32xf32> -> vector<16x32xf32>
    %7 = arith.addf %3, %6 : vector<16x32xf32>
    %c0_6 = arith.constant 0 : index
    %c0_7 = arith.constant 0 : index
    %8 = vector.load %arg7[%c0_6, %c0_7] : memref<16x32xf32, #tpu.memory_space<vmem>>, vector<16x32xf32>
    tpu.vector_store %arg7[%c0_6, %c0_7], %7 {strides = array<i32>} : memref<16x32xf32, #tpu.memory_space<vmem>>, vector<16x32xf32>,
    %c0_i32_8 = arith.constant 0 : i32
    %9 = arith.cmpi eq, %arg2, %c0_i32_8 : i32
    %10 = arith.extui %9 : i1 to i32
    %c0_i32_9 = arith.constant 0 : i32
    %11 = arith.cmpi ne, %10, %c0_i32_9 : i32
    scf.if %11 {
      %c0_10 = arith.constant 0 : index
      %c0_11 = arith.constant 0 : index
      %12 = vector.load %arg7[%c0_10, %c0_11] : memref<16x32xf32, #tpu.memory_space<vmem>>, vector<16x32xf32>
      %c0_12 = arith.constant 0 : index
      %c0_13 = arith.constant 0 : index
      %13 = vector.load %arg5[%c0_12, %c0_13] : memref<1x32xf32, #tpu.memory_space<vmem>>, vector<1x32xf32>
      %14 = vector.broadcast %13 : vector<1x32xf32> to vector<16x32xf32>
      %15 = arith.addf %12, %14 : vector<16x32xf32>
      %16 = arith.truncf %15 : vector<16x32xf32> to vector<16x32xbf16>
      %c0_14 = arith.constant 0 : index
      %c0_15 = arith.constant 0 : index
      %17 = vector.load %arg6[%c0_14, %c0_15] : memref<16x32xbf16, #tpu.memory_space<vmem>>, vector<16x32xbf16>
      tpu.vector_store %arg6[%c0_14, %c0_15], %16 {strides = array<i32>} : memref<16x32xbf16, #tpu.memory_space<vmem>>, vector<16x32xbf16>,
    } else {
    }
    return
  }
  func.func @transform_0(%arg0: i32, %arg1: i32, %arg2: i32) -> (i32, i32) {
    %c0_i32 = arith.constant 0 : i32
    return %arg0, %arg2 : i32, i32
  }
  func.func @transform_1(%arg0: i32, %arg1: i32, %arg2: i32) -> (i32, i32) {
    %c0_i32 = arith.constant 0 : i32
    return %arg2, %arg1 : i32, i32
  }
  func.func @transform_2(%arg0: i32, %arg1: i32, %arg2: i32) -> (i32, i32) {
    %c0_i32 = arith.constant 0 : i32
    %c0_i32_0 = arith.constant 0 : i32
    return %c0_i32, %arg1 : i32, i32
  }
  func.func @transform_3(%arg0: i32, %arg1: i32, %arg2: i32) -> (i32, i32) {
    %c0_i32 = arith.constant 0 : i32
    return %arg0, %arg1 : i32, i32
  }
}

</mosaic_0001>

<bundles_post_ra>
// kernel: tpu_custom_call.1
= control target key start
LH: loop header
LB: loop body
LE: loop exit
PB: predicated region body
PF: predicated region fallthrough
CT: control target
= control target key end

     0   :  { %8 = vsyncpa [#allocation4], 0  ;;  %s317_s0 = inlined_call_operand.hbm [shape: bf16[16,32], index: 0, kind: input, shape index: {}]   ;;  %s318_s1 = inlined_call_operand.hbm [shape: bf16[32,32], index: 1, kind: input, shape index: {}]   ;;  %s319_s2 = inlined_call_operand.vmem [shape: f32[1,32], index: 2, kind: input, shape index: {}]   ;;  %s320_s3 = inlined_call_operand.hbm [shape: bf16[16,32], index: 3, kind: output, shape index: {}]  }
   0x1   :  { %9 = vsyncpa [#allocation7], 0 }
   0x2   :  { %10 = vsyncpa [#allocation5], 0  ;;  %s264_s12 = smov [#allocation3]  }
   0x3   :  { %s16_s13 = sshll.u32 %s264_s12, 4  ;;  %s17_s13 = int_to_ptr.vmem [resolvable:$true] %s16_s13 }
   0x4   :  { %s206_s14 = scalar_lea.vmem %s17_s13, 128  ;;  %p211_p1 = scmp.lt.s32.totalorder %s17_s13, %s17_s13 }
   0x5   :  { %p207_p0 = scmp.ne.s32.totalorder %s17_s13, %s206_s14  ;;  %p212_p2 = scmp.lt.s32.totalorder %s206_s14, %s206_s14 }
   0x7   :  { %p213_p3 = por %p212_p2, %p211_p1 }
   0x9   :  { %p214_p4 = pnand %p213_p3, %p207_p0 }
   0xb   :  { %217 = shalt.err (!%p214_p4)
}
   0xc   :  { %s265_s15 = smov 64   ;;  %s266_s16 = smov 4  }
   0xd   :  { %22 = dma.hbm_to_vmem [thread:$0]  %s317_s0, 128, %s17_s13, [#allocation4], %s265_s15, %s265_s15, %s266_s16  }
   0xe   :  { %s267_s19 = smov [#allocation6]  }
   0xf   :  { %s28_s20 = sshll.u32 %s267_s19, 4  ;;  %s29_s20 = int_to_ptr.vmem [resolvable:$true] %s28_s20 }
  0x10   :  { %s226_s21 = scalar_lea.vmem %s29_s20, 256  ;;  %p231_p6 = scmp.lt.s32.totalorder %s29_s20, %s29_s20 }
  0x11   :  { %p227_p5 = scmp.ne.s32.totalorder %s29_s20, %s226_s21  ;;  %p232_p7 = scmp.lt.s32.totalorder %s226_s21, %s226_s21 }
  0x13   :  { %p233_p8 = por %p232_p7, %p231_p6 }
  0x15   :  { %p234_p9 = pnand %p233_p8, %p227_p5 }
  0x17   :  { %237 = shalt.err (!%p234_p9)
}
  0x18   :  { %34 = dma.hbm_to_vmem [thread:$0]  %s318_s1, 256, %s29_s20, [#allocation7], %s265_s15, %s265_s15, %s266_s16  }
  0x19   :  { %258 = dma.done.wait [#allocation4], 128  }
  0x1a   :  { %259 = vsyncadd [#allocation4], 4294967168 }
  0x1b   :  { %260 = dma.done.wait [#allocation7], 256  }
  0x1c   :  { %261 = vsyncadd [#allocation7], 4294967040  ;;  %vm48_vm0 = vcmask 261120   ;;  %v268_v0 = vmov 0.0   ;;  %vm269_vm1 = vmmov 0   ;;  %v195_v1 = vld [vmem:[#allocation6 + $0x8] sm:$0xff]  }
  0x1d   :  { %180 = vmatprep.subr.bf16.mxu0 %v268_v0  ;;  %184 = vmatprep.mubr.msk.bf16.mxu0 %vm269_vm1, %v268_v0  ;;  %49 = vst.msk [vmem:[#allocation2] sm:$0xff] %vm48_vm0, %v268_v0  ;;  %50 = vst.msk [vmem:[#allocation2 + $0x8] sm:$0xff] %vm48_vm0, %v268_v0  ;;  %v196_v2 = vld [vmem:[#allocation6] sm:$0xff]   ;;  %v197_v3 = vld [vmem:[#allocation3] sm:$0xff]   ;;  %vm147_vm2 = vcmask 257024   ;;  %s270_s24 = smov [#allocation8]  }
  0x1e   :  { %181 = vmatpush3.bf16.msra.mxu0 %v195_v1  ;;  %v172_v12 = vld [vmem:[%s319_s2] ss:$0 sm:$0xff]  ;;  %s155_s25 = sshll.u32 %s270_s24, 4  ;;  %s156_s25 = int_to_ptr.vmem [resolvable:$true] %s155_s25 }
  0x1f   :  { %182 = vmatprep.subr.bf16.mxu0 %v268_v0  ;;  %s238_s26 = scalar_lea.vmem %s156_s25, 128  ;;  %p243_p11 = scmp.lt.s32.totalorder %s156_s25, %s156_s25 }
  0x20   :  { %p239_p10 = scmp.ne.s32.totalorder %s156_s25, %s238_s26  ;;  %p244_p12 = scmp.lt.s32.totalorder %s238_s26, %s238_s26 }
  0x22   :  { %183 = vmatpush3.bf16.msra.mxu0 %v196_v2  ;;  %p245_p13 = por %p244_p12, %p243_p11 }
  0x24   :  { %v51_v4 = vld [vmem:[#allocation2] sm:$0xff]  ;;  %v52_v8 = vld [vmem:[#allocation2 + $0x8] sm:$0xff]  ;;  %p246_p0 = pnand %p245_p13, %p239_p10 }
  0x25   :  { %185 = vmatmul.mubr.msk.bf16.vlgmr.msra.gmra.mxu0 %vm48_vm0, %v197_v3 }
  0xe5   :  { %v114_v5 = vpop.f32.mrf.mxu0 }
  0xe6   :  { %v121_v6 = vadd.f32 %v114_v5, %v51_v4 }
  0xe7   :  { %v186_v7 = vpop.f32.mrf.mxu0 }
  0xe8   :  { %123 = vst.msk [vmem:[#allocation2] sm:$0xff] %vm48_vm0, %v121_v6 }
  0xe9   :  { %v117_v9 = vpop.f32.mrf.mxu0 }
  0xea   :  { %v122_v10 = vadd.f32 %v117_v9, %v52_v8 }
  0xeb   :  { %v187_v11 = vpop.f32.mrf.mxu0 }
  0xec   :  { %124 = vst.msk [vmem:[#allocation2 + $0x8] sm:$0xff] %vm48_vm0, %v122_v10 }
  0xef   :  { %v128_v13 = vld [vmem:[#allocation2] sm:$0xff] }
  0xf0   :  { %v137_v14 = vadd.f32 %v172_v12, %v128_v13 }
  0xf2   :  { %v175_v15 = vpack.c.bf16 %v137_v14, %v137_v14 }
  0xf3   :  { %v129_v16 = vld [vmem:[#allocation2 + $0x8] sm:$0xff] }
  0xf4   :  { %v138_v17 = vadd.f32 %v172_v12, %v129_v16  ;;  %148 = vst.msk [vmem:[#allocation8] sm:$0xf] %vm147_vm2, %v175_v15 }
  0xf6   :  { %v176_v18 = vpack.c.bf16 %v138_v17, %v138_v17 }
  0xf8   :  { %149 = vst.msk [vmem:[#allocation8 + $0x4] sm:$0xf] %vm147_vm2, %v176_v18 }
  0xf9   :  { %249 = shalt.err (!%p246_p0)
}
  0xfa   :  { %161 = dma.vmem_to_hbm [thread:$0]  %s156_s25, 128, %s320_s3, [#allocation5], %s265_s15, %s265_s15, %s266_s16  }
  0xfb   :  { %262 = dma.done.wait [#allocation5], 128  }
  0xfc   :  { %263 = vsyncadd [#allocation5], 4294967168 }
  0xfd   :  { %165 = vsyncpa [#allocation4], 1 }
  0xfe   :  { %166 = vsyncpa [#allocation7], 1 }
  0xff   :  { %167 = vsyncpa [#allocation5], 1 }

</bundles_post_ra>
